<compile_context>
chip_gen: v7x
topology: tpu7x:2x2x1
jax: 0.10.0
libtpu: 0.0.40
codegen_flags: <defaults>
</compile_context>

<pallas_src>
import functools

import jax
import jax.numpy as jnp
from jax.experimental import pallas as pl
from jax.experimental.pallas import tpu as pltpu


# ----------------------------------------------------------------------------
# Pallas kernel: fused (per-group pixel shift) + (1x1 conv) for one row-tile.
# ----------------------------------------------------------------------------
def _shift_conv2d_kernel(x_ref, w_ref, b_ref, wup_ref, wdn_ref, up_ref, dn_ref,
                         o_ref, *, g, width):
    # x_ref : (Cin, S_tile)  TH whole rows, flattened (lane-dense)
    # w_ref : (Cout, Cin)    1x1-conv weight          b_ref : (Cout, 1)
    # wup_ref/wdn_ref : (Cout, g)  weight columns of the up / down groups
    # up_ref/dn_ref   : (g, W)     halo row above / below this tile (zeros at
    #                              the image border)
    # o_ref : (Cout, S_tile)
    x = x_ref[...]
    cin, s = x.shape

    # Small mask tensors only: (1, S_tile) and (Cin, 1); jnp.where broadcasts.
    pos = jax.lax.broadcasted_iota(jnp.int32, (1, s), 1)   # flattened row*W+col
    col = pos % width
    chan = jax.lax.broadcasted_iota(jnp.int32, (cin, 1), 0)
    zero = jnp.zeros((), x.dtype)

    # Circular rolls along the flattened spatial axis (XLU), then zero the
    # positions whose read crosses a row edge / tile boundary.
    # pltpu.roll follows np.roll semantics: y[i] = x[(i - shift) mod S].
    read_r = jnp.where(col == width - 1, zero, pltpu.roll(x, shift=s - 1, axis=1))
    read_l = jnp.where(col == 0,        zero, pltpu.roll(x, shift=1, axis=1))
    read_d = jnp.where(pos >= s - width, zero, pltpu.roll(x, shift=s - width, axis=1))
    read_u = jnp.where(pos < width,      zero, pltpu.roll(x, shift=width, axis=1))

    shifted = jnp.where(chan < 1 * g, read_r,
              jnp.where(chan < 2 * g, read_l,
              jnp.where(chan < 3 * g, read_d,
              jnp.where(chan < 4 * g, read_u, x))))

    acc = jnp.dot(w_ref[...], shifted, preferred_element_type=jnp.float32)
    acc = acc + b_ref[...]

    # Halo corrections for the rows zeroed at the tile boundary:
    #   first row of tile: "read above" group sees the last row of the previous
    #   tile; last row: "read below" group sees the first row of the next tile.
    corr_up = jnp.dot(wup_ref[...], up_ref[...], preferred_element_type=jnp.float32)
    corr_dn = jnp.dot(wdn_ref[...], dn_ref[...], preferred_element_type=jnp.float32)

    o_ref[...] = acc.astype(o_ref.dtype)                      # lane-dense store
    o_ref[:, 0:width] = (acc[:, 0:width] + corr_up).astype(o_ref.dtype)
    o_ref[:, s - width:s] = (acc[:, s - width:s] + corr_dn).astype(o_ref.dtype)


# ----------------------------------------------------------------------------
# Tile-size heuristic: whole rows, lane-dense, bounded VMEM residency.
# ----------------------------------------------------------------------------
def _pick_rows_per_tile(H, W, cin, cout, in_bytes, *, max_rows=None,
                        vmem_budget_bytes=20 * 1024 * 1024):
    # Rough per-row residency: double-buffered x block + in-kernel full-width
    # temporaries (rolls / selects, f32) + double-buffered f32 output/acc.
    per_row = W * (2 * cin * in_bytes + 6 * cin * 4 + 4 * cout * 4)
    cap = max(1, vmem_budget_bytes // max(per_row, 1))
    if max_rows is not None:
        cap = min(cap, max(1, max_rows))
    divisors = [d for d in range(1, H + 1) if H % d == 0]
    # Lane-dense tiles (TH*W % 128 == 0) or the whole image; avoid 1-row tiles
    # so the two boundary-correction stores never alias (except trivially H==1).
    candidates = [d for d in divisors
                  if (d == H or (d * W) % 128 == 0) and d >= min(2, H)]
    fitting = [d for d in candidates if d <= cap]
    if fitting:
        return max(fitting)
    return min(candidates) if candidates else H


# ----------------------------------------------------------------------------
# Wrapper
# ----------------------------------------------------------------------------
def shift_conv2d(x, w, b, *, compute_dtype=jnp.bfloat16, out_dtype=jnp.float32,
                 max_rows_per_tile=None):
    """ShiftConv2d forward.

    x: (B, Cin, H, W) float32 NCHW   w: (Cout, Cin, 1, 1)   b: (Cout,)
    compute_dtype: matmul-operand dtype (default bf16; f32 accumulation).
                   Pass jnp.float32 for exact module numerics.
    out_dtype: output dtype (default float32, matching the module).
    Returns: (B, Cout, H, W) out_dtype.
    """
    B, Cin, H, W = x.shape
    Cout = w.shape[0]
    if Cin < 5:
        raise ValueError(
            f"ShiftConv2d expects inp_channels >= n_div (5); got {Cin}")
    g = Cin // 5
    S = H * W

    cdt = jnp.dtype(compute_dtype) if compute_dtype is not None else x.dtype
    TH = _pick_rows_per_tile(H, W, Cin, Cout, cdt.itemsize,
                             max_rows=max_rows_per_tile)
    T = H // TH
    S_tile = TH * W

    # Halo rows (only the channel groups that read across a tile boundary):
    #   up_halo[b, t] = x[b, 3g:4g, t*TH - 1, :]   (zeros for t == 0)
    #   dn_halo[b, t] = x[b, 2g:3g, (t+1)*TH, :]   (zeros for t == T-1)
    xu = x[:, 3 * g:4 * g, :, :]
    xd = x[:, 2 * g:3 * g, :, :]
    rows_above = xu[:, :, TH - 1:H - 1:TH, :].transpose(0, 2, 1, 3)  # (B,T-1,g,W)
    rows_below = xd[:, :, TH:H:TH, :].transpose(0, 2, 1, 3)          # (B,T-1,g,W)
    zrow = jnp.zeros((B, 1, g, W), x.dtype)
    up_halo = jnp.concatenate([zrow, rows_above], axis=1).astype(cdt)  # (B,T,g,W)
    dn_halo = jnp.concatenate([rows_below, zrow], axis=1).astype(cdt)

    x_flat = x.reshape(B, Cin, S).astype(cdt)       # contiguous reshape, no copy
    w_mat = w.reshape(Cout, Cin).astype(cdt)
    w_up = w_mat[:, 3 * g:4 * g]                    # (Cout, g)
    w_dn = w_mat[:, 2 * g:3 * g]                    # (Cout, g)
    b_mat = b.reshape(Cout, 1).astype(jnp.float32)

    kernel = functools.partial(_shift_conv2d_kernel, g=g, width=W)

    out = pl.pallas_call(
        kernel,
        out_shape=jax.ShapeDtypeStruct((B, Cout, S), out_dtype),
        grid=(B, T),
        in_specs=[
            pl.BlockSpec((None, Cin, S_tile), lambda bi, ti: (bi, 0, ti)),  # x tile
            pl.BlockSpec((Cout, Cin), lambda bi, ti: (0, 0)),               # weights
            pl.BlockSpec((Cout, 1), lambda bi, ti: (0, 0)),                 # bias
            pl.BlockSpec((Cout, g), lambda bi, ti: (0, 0)),                 # w (up grp)
            pl.BlockSpec((Cout, g), lambda bi, ti: (0, 0)),                 # w (dn grp)
            pl.BlockSpec((None, None, g, W), lambda bi, ti: (bi, ti, 0, 0)),  # up halo
            pl.BlockSpec((None, None, g, W), lambda bi, ti: (bi, ti, 0, 0)),  # dn halo
        ],
        out_specs=pl.BlockSpec((None, Cout, S_tile), lambda bi, ti: (bi, 0, ti)),
        compiler_params=pltpu.CompilerParams(
            dimension_semantics=("parallel", "parallel"),
            vmem_limit_bytes=48 * 1024 * 1024),
    )(x_flat, w_mat, b_mat, w_up, w_dn, up_halo, dn_halo)

    return out.reshape(B, Cout, H, W)


# ----------------------------------------------------------------------------
# Pure-JAX reference (NCHW, explicit slicing) for correctness checking.
# ----------------------------------------------------------------------------
def shift_conv2d_ref(x, w, b):
    B, C, H, W = x.shape
    g = C // 5

    def shift(xx, dy, dx):
        # y[h, w] = x[h + dy, w + dx], zero outside the image.
        y = jnp.zeros_like(xx)
        hs = slice(max(dy, 0), H + min(dy, 0))
        ws = slice(max(dx, 0), W + min(dx, 0))
        hd = slice(max(-dy, 0), H + min(-dy, 0))
        wd = slice(max(-dx, 0), W + min(-dx, 0))
        return y.at[:, :, hd, wd].set(xx[:, :, hs, ws])

    parts = [
        shift(x[:, 0 * g:1 * g], 0, 1),    # read right
        shift(x[:, 1 * g:2 * g], 0, -1),   # read left
        shift(x[:, 2 * g:3 * g], 1, 0),    # read below
        shift(x[:, 3 * g:4 * g], -1, 0),   # read above
        x[:, 4 * g:],                      # identity
    ]
    xs = jnp.concatenate(parts, axis=1)
    w_mat = w.reshape(w.shape[0], C)
    return jnp.einsum("oc,bchw->bohw", w_mat, xs) + b[None, :, None, None]


if __name__ == "__main__":
    # Cin divisible by n_div=5 so all five shift groups are exercised.
    B, Cin, Cout, H, W = 2, 20, 32, 16, 16

    key = jax.random.PRNGKey(0)
    kx, kw, kb = jax.random.split(key, 3)
    x = jax.random.normal(kx, (B, Cin, H, W), jnp.float32)
    bound = 1.0 / (Cin ** 0.5)
    w = jax.random.uniform(kw, (Cout, Cin, 1, 1), jnp.float32, -bound, bound)
    b = jax.random.uniform(kb, (Cout,), jnp.float32, -bound, bound)

    ref = shift_conv2d_ref(x, w, b)

    # 1) exact-precision path, tiled along H (2 tiles -> exercises halo logic).
    out_f32 = jax.block_until_ready(
        shift_conv2d(x, w, b, compute_dtype=jnp.float32, max_rows_per_tile=8))
    assert out_f32.shape == (B, Cout, H, W), out_f32.shape
    err = float(jnp.max(jnp.abs(out_f32 - ref)))
    assert err < 1e-4, f"tiled f32 mismatch: {err}"

    # 2) exact-precision path, whole-image tile (zero halos).
    out_full = jax.block_until_ready(
        shift_conv2d(x, w, b, compute_dtype=jnp.float32))
    err = float(jnp.max(jnp.abs(out_full - ref)))
    assert err < 1e-4, f"whole-image f32 mismatch: {err}"

    # 3) default bf16-operand fast path (f32 accumulation): compare against the
    #    reference evaluated on bf16-quantized operands.
    ref_q = shift_conv2d_ref(
        x.astype(jnp.bfloat16).astype(jnp.float32),
        w.astype(jnp.bfloat16).astype(jnp.float32), b)
    out_bf16 = jax.block_until_ready(shift_conv2d(x, w, b, max_rows_per_tile=8))
    err = float(jnp.max(jnp.abs(out_bf16 - ref_q)))
    assert err < 5e-3, f"bf16 mismatch: {err}"

    print("KERNEL_OK")
</pallas_src>

<mosaic_0001>
module attributes {stable_mosaic.version = 11 : i64} {
  func.func @_shift_conv2d_kernel(%arg0: i32, %arg1: i32, %arg2: memref<1x20x128xf32, #tpu.memory_space<vmem>>, %arg3: memref<32x20xf32, #tpu.memory_space<vmem>>, %arg4: memref<32x1xf32, #tpu.memory_space<vmem>>, %arg5: memref<32x4xf32, #tpu.memory_space<vmem>>, %arg6: memref<32x4xf32, #tpu.memory_space<vmem>>, %arg7: memref<1x1x4x16xf32, #tpu.memory_space<vmem>>, %arg8: memref<1x1x4x16xf32, #tpu.memory_space<vmem>>, %arg9: memref<1x32x128xf32, #tpu.memory_space<vmem>>) attributes {dimension_semantics = [#tpu.dimension_semantics<parallel>, #tpu.dimension_semantics<parallel>], iteration_bounds = array<i64: 2, 2>, scalar_prefetch = 0 : i64, scratch_operands = 0 : i64, tpu.core_type = #tpu.core_type<tc>, window_params = [{transform_indices = @transform_0, window_bounds = array<i64: 1, 20, 128>}, {pipeline_mode = #tpu.pipeline_mode<synchronous>, transform_indices = @transform_1, window_bounds = array<i64: 32, 20>}, {pipeline_mode = #tpu.pipeline_mode<synchronous>, transform_indices = @transform_2, window_bounds = array<i64: 32, 1>}, {pipeline_mode = #tpu.pipeline_mode<synchronous>, transform_indices = @transform_3, window_bounds = array<i64: 32, 4>}, {pipeline_mode = #tpu.pipeline_mode<synchronous>, transform_indices = @transform_4, window_bounds = array<i64: 32, 4>}, {transform_indices = @transform_5, window_bounds = array<i64: 1, 1, 4, 16>}, {transform_indices = @transform_6, window_bounds = array<i64: 1, 1, 4, 16>}, {transform_indices = @transform_7, window_bounds = array<i64: 1, 32, 128>}]} {
    %c0 = arith.constant 0 : index
    %c0_0 = arith.constant 0 : index
    %c0_1 = arith.constant 0 : index
    %0 = vector.load %arg2[%c0, %c0_0, %c0_1] : memref<1x20x128xf32, #tpu.memory_space<vmem>>, vector<1x20x128xf32>
    %1 = vector.shape_cast %0 : vector<1x20x128xf32> to vector<20x128xf32>
    %2 = tpu.iota {dimensions = array<i32: 1>} : vector<1x128xi32>
    %c16_i32 = arith.constant 16 : i32
    %c0_i32 = arith.constant 0 : i32
    %3 = arith.cmpi eq, %c16_i32, %c0_i32 : i32
    %c1_i32 = arith.constant 1 : i32
    %4 = arith.select %3, %c1_i32, %c16_i32 : i32
    %5 = vector.broadcast %4 : i32 to vector<1x128xi32>
    %6 = arith.remsi %2, %5 : vector<1x128xi32>
    %c0_i32_2 = arith.constant 0 : i32
    %7 = vector.broadcast %c0_i32_2 : i32 to vector<1x128xi32>
    %8 = arith.cmpi ne, %6, %7 : vector<1x128xi32>
    %c0_i32_3 = arith.constant 0 : i32
    %9 = vector.broadcast %c0_i32_3 : i32 to vector<1x128xi32>
    %10 = arith.cmpi slt, %6, %9 : vector<1x128xi32>
    %c0_i32_4 = arith.constant 0 : i32
    %11 = arith.cmpi slt, %4, %c0_i32_4 : i32
    %12 = vector.broadcast %11 : i1 to vector<1x128xi1>
    %13 = vector.broadcast %12 : vector<1x128xi1> to vector<1x128xi1>
    %14 = arith.xori %10, %13 : vector<1x128xi1>
    %15 = arith.andi %14, %8 : vector<1x128xi1>
    %16 = vector.broadcast %4 : i32 to vector<1x128xi32>
    %17 = arith.addi %6, %16 : vector<1x128xi32>
    %18 = arith.select %15, %17, %6 : vector<1x128xi1>, vector<1x128xi32>
    %19 = tpu.iota {dimensions = array<i32: 0>} : vector<20x1xi32>
    %c15_i32 = arith.constant 15 : i32
    %20 = vector.broadcast %c15_i32 : i32 to vector<1x128xi32>
    %21 = arith.cmpi eq, %18, %20 : vector<1x128xi32>
    %c127_i32 = arith.constant 127 : i32
    %22 = tpu.dynamic_rotate %1 by %c127_i32 dim 1 : vector<20x128xf32>, i32 -> vector<20x128xf32>
    %cst = arith.constant 0.000000e+00 : f32
    %23 = vector.shape_cast %21 : vector<1x128xi1> to vector<1x128xi1>
    %24 = vector.broadcast %23 : vector<1x128xi1> to vector<20x128xi1>
    %25 = vector.broadcast %cst : f32 to vector<20x128xf32>
    %26 = arith.select %24, %25, %22 : vector<20x128xi1>, vector<20x128xf32>
    %c0_i32_5 = arith.constant 0 : i32
    %27 = vector.broadcast %c0_i32_5 : i32 to vector<1x128xi32>
    %28 = arith.cmpi eq, %18, %27 : vector<1x128xi32>
    %c1_i32_6 = arith.constant 1 : i32
    %29 = tpu.dynamic_rotate %1 by %c1_i32_6 dim 1 : vector<20x128xf32>, i32 -> vector<20x128xf32>
    %cst_7 = arith.constant 0.000000e+00 : f32
    %30 = vector.shape_cast %28 : vector<1x128xi1> to vector<1x128xi1>
    %31 = vector.broadcast %30 : vector<1x128xi1> to vector<20x128xi1>
    %32 = vector.broadcast %cst_7 : f32 to vector<20x128xf32>
    %33 = arith.select %31, %32, %29 : vector<20x128xi1>, vector<20x128xf32>
    %c112_i32 = arith.constant 112 : i32
    %34 = vector.broadcast %c112_i32 : i32 to vector<1x128xi32>
    %35 = arith.cmpi sge, %2, %34 : vector<1x128xi32>
    %c112_i32_8 = arith.constant 112 : i32
    %36 = tpu.dynamic_rotate %1 by %c112_i32_8 dim 1 : vector<20x128xf32>, i32 -> vector<20x128xf32>
    %cst_9 = arith.constant 0.000000e+00 : f32
    %37 = vector.shape_cast %35 : vector<1x128xi1> to vector<1x128xi1>
    %38 = vector.broadcast %37 : vector<1x128xi1> to vector<20x128xi1>
    %39 = vector.broadcast %cst_9 : f32 to vector<20x128xf32>
    %40 = arith.select %38, %39, %36 : vector<20x128xi1>, vector<20x128xf32>
    %c16_i32_10 = arith.constant 16 : i32
    %41 = vector.broadcast %c16_i32_10 : i32 to vector<1x128xi32>
    %42 = arith.cmpi slt, %2, %41 : vector<1x128xi32>
    %c16_i32_11 = arith.constant 16 : i32
    %43 = tpu.dynamic_rotate %1 by %c16_i32_11 dim 1 : vector<20x128xf32>, i32 -> vector<20x128xf32>
    %cst_12 = arith.constant 0.000000e+00 : f32
    %44 = vector.shape_cast %42 : vector<1x128xi1> to vector<1x128xi1>
    %45 = vector.broadcast %44 : vector<1x128xi1> to vector<20x128xi1>
    %46 = vector.broadcast %cst_12 : f32 to vector<20x128xf32>
    %47 = arith.select %45, %46, %43 : vector<20x128xi1>, vector<20x128xf32>
    %c4_i32 = arith.constant 4 : i32
    %48 = vector.broadcast %c4_i32 : i32 to vector<20x1xi32>
    %49 = arith.cmpi slt, %19, %48 : vector<20x1xi32>
    %c8_i32 = arith.constant 8 : i32
    %50 = vector.broadcast %c8_i32 : i32 to vector<20x1xi32>
    %51 = arith.cmpi slt, %19, %50 : vector<20x1xi32>
    %c12_i32 = arith.constant 12 : i32
    %52 = vector.broadcast %c12_i32 : i32 to vector<20x1xi32>
    %53 = arith.cmpi slt, %19, %52 : vector<20x1xi32>
    %c16_i32_13 = arith.constant 16 : i32
    %54 = vector.broadcast %c16_i32_13 : i32 to vector<20x1xi32>
    %55 = arith.cmpi slt, %19, %54 : vector<20x1xi32>
    %56 = vector.shape_cast %55 : vector<20x1xi1> to vector<20x1xi1>
    %57 = vector.broadcast %56 : vector<20x1xi1> to vector<20x128xi1>
    %58 = arith.select %57, %47, %1 : vector<20x128xi1>, vector<20x128xf32>
    %59 = vector.shape_cast %53 : vector<20x1xi1> to vector<20x1xi1>
    %60 = vector.broadcast %59 : vector<20x1xi1> to vector<20x128xi1>
    %61 = arith.select %60, %40, %58 : vector<20x128xi1>, vector<20x128xf32>
    %62 = vector.shape_cast %51 : vector<20x1xi1> to vector<20x1xi1>
    %63 = vector.broadcast %62 : vector<20x1xi1> to vector<20x128xi1>
    %64 = arith.select %63, %33, %61 : vector<20x128xi1>, vector<20x128xf32>
    %65 = vector.shape_cast %49 : vector<20x1xi1> to vector<20x1xi1>
    %66 = vector.broadcast %65 : vector<20x1xi1> to vector<20x128xi1>
    %67 = arith.select %66, %26, %64 : vector<20x128xi1>, vector<20x128xf32>
    %c0_14 = arith.constant 0 : index
    %c0_15 = arith.constant 0 : index
    %68 = vector.load %arg3[%c0_14, %c0_15] : memref<32x20xf32, #tpu.memory_space<vmem>>, vector<32x20xf32>
    %cst_16 = arith.constant dense<0.000000e+00> : vector<32x128xf32>
    %69 = tpu.matmul %68, %67, %cst_16 {dimension_numbers = #tpu.dot_dimension_numbers<[1], [0], [0], [1], [0, 0, 1, 1], [], []>} : vector<32x20xf32>, vector<20x128xf32>, vector<32x128xf32> -> vector<32x128xf32>
    %c0_17 = arith.constant 0 : index
    %c0_18 = arith.constant 0 : index
    %70 = vector.load %arg4[%c0_17, %c0_18] : memref<32x1xf32, #tpu.memory_space<vmem>>, vector<32x1xf32>
    %71 = vector.broadcast %70 : vector<32x1xf32> to vector<32x128xf32>
    %72 = arith.addf %69, %71 : vector<32x128xf32>
    %c0_19 = arith.constant 0 : index
    %c0_20 = arith.constant 0 : index
    %73 = vector.load %arg5[%c0_19, %c0_20] : memref<32x4xf32, #tpu.memory_space<vmem>>, vector<32x4xf32>
    %c0_21 = arith.constant 0 : index
    %c0_22 = arith.constant 0 : index
    %c0_23 = arith.constant 0 : index
    %c0_24 = arith.constant 0 : index
    %74 = vector.load %arg7[%c0_21, %c0_22, %c0_23, %c0_24] : memref<1x1x4x16xf32, #tpu.memory_space<vmem>>, vector<1x1x4x16xf32>
    %75 = vector.shape_cast %74 : vector<1x1x4x16xf32> to vector<4x16xf32>
    %cst_25 = arith.constant dense<0.000000e+00> : vector<32x16xf32>
    %76 = tpu.matmul %73, %75, %cst_25 {dimension_numbers = #tpu.dot_dimension_numbers<[1], [0], [0], [1], [0, 0, 1, 1], [], []>} : vector<32x4xf32>, vector<4x16xf32>, vector<32x16xf32> -> vector<32x16xf32>
    %c0_26 = arith.constant 0 : index
    %c0_27 = arith.constant 0 : index
    %77 = vector.load %arg6[%c0_26, %c0_27] : memref<32x4xf32, #tpu.memory_space<vmem>>, vector<32x4xf32>
    %c0_28 = arith.constant 0 : index
    %c0_29 = arith.constant 0 : index
    %c0_30 = arith.constant 0 : index
    %c0_31 = arith.constant 0 : index
    %78 = vector.load %arg8[%c0_28, %c0_29, %c0_30, %c0_31] : memref<1x1x4x16xf32, #tpu.memory_space<vmem>>, vector<1x1x4x16xf32>
    %79 = vector.shape_cast %78 : vector<1x1x4x16xf32> to vector<4x16xf32>
    %cst_32 = arith.constant dense<0.000000e+00> : vector<32x16xf32>
    %80 = tpu.matmul %77, %79, %cst_32 {dimension_numbers = #tpu.dot_dimension_numbers<[1], [0], [0], [1], [0, 0, 1, 1], [], []>} : vector<32x4xf32>, vector<4x16xf32>, vector<32x16xf32> -> vector<32x16xf32>
    %c0_33 = arith.constant 0 : index
    %c0_34 = arith.constant 0 : index
    %c0_35 = arith.constant 0 : index
    %81 = vector.load %arg9[%c0_33, %c0_34, %c0_35] : memref<1x32x128xf32, #tpu.memory_space<vmem>>, vector<1x32x128xf32>
    %82 = vector.shape_cast %81 : vector<1x32x128xf32> to vector<32x128xf32>
    %83 = vector.shape_cast %72 : vector<32x128xf32> to vector<1x32x128xf32>
    tpu.vector_store %arg9[%c0_33, %c0_34, %c0_35], %83 {strides = array<i32>} : memref<1x32x128xf32, #tpu.memory_space<vmem>>, vector<1x32x128xf32>,
    %84 = vector.extract_strided_slice %72 {offsets = [0, 0], sizes = [32, 16], strides = [1, 1]} : vector<32x128xf32> to vector<32x16xf32>
    %85 = arith.addf %84, %76 : vector<32x16xf32>
    %c0_36 = arith.constant 0 : index
    %c0_37 = arith.constant 0 : index
    %c0_38 = arith.constant 0 : index
    %86 = vector.load %arg9[%c0_36, %c0_37, %c0_38] : memref<1x32x128xf32, #tpu.memory_space<vmem>>, vector<1x32x16xf32>
    %87 = vector.shape_cast %86 : vector<1x32x16xf32> to vector<32x16xf32>
    %88 = vector.shape_cast %85 : vector<32x16xf32> to vector<1x32x16xf32>
    tpu.vector_store %arg9[%c0_36, %c0_37, %c0_38], %88 {strides = array<i32>} : memref<1x32x128xf32, #tpu.memory_space<vmem>>, vector<1x32x16xf32>,
    %89 = vector.extract_strided_slice %72 {offsets = [0, 112], sizes = [32, 16], strides = [1, 1]} : vector<32x128xf32> to vector<32x16xf32>
    %90 = arith.addf %89, %80 : vector<32x16xf32>
    %c0_39 = arith.constant 0 : index
    %c0_40 = arith.constant 0 : index
    %c112 = arith.constant 112 : index
    %91 = vector.load %arg9[%c0_39, %c0_40, %c112] : memref<1x32x128xf32, #tpu.memory_space<vmem>>, vector<1x32x16xf32>
    %92 = vector.shape_cast %91 : vector<1x32x16xf32> to vector<32x16xf32>
    %93 = vector.shape_cast %90 : vector<32x16xf32> to vector<1x32x16xf32>
    tpu.vector_store %arg9[%c0_39, %c0_40, %c112], %93 {strides = array<i32>} : memref<1x32x128xf32, #tpu.memory_space<vmem>>, vector<1x32x16xf32>,
    return
  }
  func.func @transform_0(%arg0: i32, %arg1: i32) -> (i32, i32, i32) {
    %c0_i32 = arith.constant 0 : i32
    %c0_i32_0 = arith.constant 0 : i32
    return %arg0, %c0_i32, %arg1 : i32, i32, i32
  }
  func.func @transform_1(%arg0: i32, %arg1: i32) -> (i32, i32) {
    %c0_i32 = arith.constant 0 : i32
    %c0_i32_0 = arith.constant 0 : i32
    %c0_i32_1 = arith.constant 0 : i32
    return %c0_i32, %c0_i32_0 : i32, i32
  }
  func.func @transform_2(%arg0: i32, %arg1: i32) -> (i32, i32) {
    %c0_i32 = arith.constant 0 : i32
    %c0_i32_0 = arith.constant 0 : i32
    %c0_i32_1 = arith.constant 0 : i32
    return %c0_i32, %c0_i32_0 : i32, i32
  }
  func.func @transform_3(%arg0: i32, %arg1: i32) -> (i32, i32) {
    %c0_i32 = arith.constant 0 : i32
    %c0_i32_0 = arith.constant 0 : i32
    %c0_i32_1 = arith.constant 0 : i32
    return %c0_i32, %c0_i32_0 : i32, i32
  }
  func.func @transform_4(%arg0: i32, %arg1: i32) -> (i32, i32) {
    %c0_i32 = arith.constant 0 : i32
    %c0_i32_0 = arith.constant 0 : i32
    %c0_i32_1 = arith.constant 0 : i32
    return %c0_i32, %c0_i32_0 : i32, i32
  }
  func.func @transform_5(%arg0: i32, %arg1: i32) -> (i32, i32, i32, i32) {
    %c0_i32 = arith.constant 0 : i32
    %c0_i32_0 = arith.constant 0 : i32
    %c0_i32_1 = arith.constant 0 : i32
    return %arg0, %arg1, %c0_i32, %c0_i32_0 : i32, i32, i32, i32
  }
  func.func @transform_6(%arg0: i32, %arg1: i32) -> (i32, i32, i32, i32) {
    %c0_i32 = arith.constant 0 : i32
    %c0_i32_0 = arith.constant 0 : i32
    %c0_i32_1 = arith.constant 0 : i32
    return %arg0, %arg1, %c0_i32, %c0_i32_0 : i32, i32, i32, i32
  }
  func.func @transform_7(%arg0: i32, %arg1: i32) -> (i32, i32, i32) {
    %c0_i32 = arith.constant 0 : i32
    %c0_i32_0 = arith.constant 0 : i32
    return %arg0, %c0_i32, %arg1 : i32, i32, i32
  }
}

</mosaic_0001>

<bundles_post_ra>
// kernel: tpu_custom_call.1
= control target key start
LH: loop header
LB: loop body
LE: loop exit
PB: predicated region body
PF: predicated region fallthrough
CT: control target
= control target key end

     0   :  { %s1598_s0 = inlined_call_operand.vmem [shape: f32[2,20,256], index: 0, kind: input, shape index: {}]   ;;  %s1599_s1 = inlined_call_operand.vmem [shape: f32[32,20], index: 1, kind: input, shape index: {}]   ;;  %s1600_s2 = inlined_call_operand.vmem [shape: f32[32,1], index: 2, kind: input, shape index: {}]   ;;  %s1601_s3 = inlined_call_operand.vmem [shape: f32[32,4], index: 3, kind: input, shape index: {}]   ;;  %s1602_s4 = inlined_call_operand.vmem [shape: f32[32,4], index: 4, kind: input, shape index: {}]   ;;  %s1603_s5 = inlined_call_operand.vmem [shape: f32[2,2,4,16], index: 5, kind: input, shape index: {}]   ;;  %s1604_s6 = inlined_call_operand.vmem [shape: f32[2,2,4,16], index: 6, kind: input, shape index: {}]   ;;  %s1605_s7 = inlined_call_operand.hbm [shape: f32[2,32,256], index: 7, kind: output, shape index: {}]  }
   0x1   :  { %1612 = sst [smem:[#allocation10_spill]] %s1598_s0 }
   0x2   :  { %12 = vsyncpa [#allocation4], 0 }
   0x3   :  { %14 = vsyncpa [#allocation4 + $0x1], 0  ;;  %s1338_s24 = smov 0   ;;  %s1340_s25 = smov 0  }
   0x4   :  { %s1342_s26 = smov 0   ;;  %s1344_s27 = smov 0  }
   0x5   :  { %s1346_s28 = smov 0   ;;  %s1348_s29 = smov 0  }
   0x6   :  { %s1350_s30 = smov 0   ;;  %s1352_s8 = smov 0  }
   0x7 LB: > { %1613 = sst [smem:[#allocation6_spill]] %s1279_s29  ;;  %s1029_s9 = sadd.s32 4294967295, %s1287_s8   ;;  %s1287_s8 = sphi %s1352_s8, %s20_s8   ;;  %s1283_s30 = sphi %s1350_s30, %s1625_s30   ;;  %s1279_s29 = sphi %s1348_s29, %s1624_s29   ;;  %s1275_s28 = sphi %s1346_s28, %s1623_s28   ;;  %s1271_s27 = sphi %s1344_s27, %s1622_s27   ;;  %s1267_s26 = sphi %s1342_s26, %s1628_s26   ;;  %s1263_s25 = sphi %s1340_s25, %s1627_s25   ;;  %s1259_s24 = sphi %s1338_s24, %s1626_s24  }
   0x8   : > { %1614 = sst [smem:[#allocation7_spill]] %s1283_s30  ;;  %s1030_s10 = sadd.s32 4294967294, %s1287_s8  }
   0x9   : > { %s29_s11 = sadd.s32 1, %s1279_s29  ;;  %s32_s12 = sadd.s32 1, %s1283_s30 }
   0xa   : > { %p30_p0 = scmp.ge.s32.totalorder %s29_s11, 2  ;;  %p48_p1 = scmp.ne.s32.totalorder %s1267_s26, %s1263_s25 }
   0xb   : > { %p49_p2 = scmp.eq.s32.totalorder %s1287_s8, 0  ;;  %p220_p5 = scmp.eq.s32.totalorder %s1029_s9, 3 }
   0xc   : > { %s1630_s11 = smov (%p30_p0, %s29_s11), 0  ;;  %s1632_s12 = smov (!%p30_p0, %s32_s12), %s1283_s30 }
   0xd   : > { %1615 = sst [smem:[#allocation8_spill]] %s1630_s11  ;;  %s37_s13 = ssub.s32 %s1279_s29, %s1630_s11 }
   0xe   : > { %p1390_p3 = por %p49_p2, %p48_p1  ;;  %p34_p4 = scmp.ge.s32.totalorder %s1632_s12, 2 }
   0xf   : > { %p225_p6 = scmp.ne.s32.totalorder %s1263_s25, %s1259_s24  ;;  %p226_p7 = scmp.eq.s32.totalorder %s1030_s10, 3 }
  0x10   : > { %s1634_s12 = smov (%p34_p4, %s1632_s12), 0  ;;  %p1398_p8 = por %p220_p5, %p48_p1 }
  0x11   : > { %1617 = sst [smem:[#allocation9_spill]] %s1634_s12  ;;  %p1402_p9 = por %p226_p7, %p225_p6 }
  0x12   : > { %s36_s17 = ssub.s32 %s1283_s30, %s1634_s12  ;;  %s41_s19 = sadd.s32 1, %s1267_s26 }
  0x13   : > { %s38_s18 = sor.u32 %s37_s13, %s36_s17  ;;  %p1032_p11 = scmp.ge.s32.totalorder %s1287_s8, 4 }
  0x14   : > { %p39_p10 = scmp.eq.s32.totalorder %s38_s18, 0 }
  0x15   : > { %254 = sbr.rel (%p1032_p11) target bundleno = 39 (0x27), region = 32 }
  0x16   : > { %s1410_s20 = scalar_select %p39_p10, %s1267_s26, %s41_s19  }
  0x1c   : > { %257 = sbr.rel (!%p1390_p3) target bundleno = 39 (0x27), region = 36  ;;  %s259_s21 = sand.u32 (%p1390_p3), 1, %s1267_s26  }
  0x1d   : > { %s1110_s22 = smul.u32 (%p1390_p3), 6, %s1283_s30  ;;  %s1620_s0 = sld [smem:[#allocation10_spill]] (%p1390_p3) }
  0x1e   : > { %s1109_s23 = smul.u32 (%p1390_p3), 24, %s259_s21 }
  0x1f   : > { %s263_s9 = sadd.s32 (%p1390_p3), %s1279_s29, %s1110_s22 }
  0x20   : > { %s1033_s10 = sshll.u32 (%p1390_p3), %s263_s9, 3  ;;  %s261_s18 = scalar_lea.vmem (%p1390_p3), [#allocation2], %s1109_s23 }
  0x23   : > { %s265_s17 = scalar_lea.vmem %s1620_s0, %s1033_s10 }
  0x24   : > { %v297_v0 = vld [vmem:[%s265_s17] sm:$0xff]  ;;  %v299_v1 = vld [vmem:[%s265_s17 + $0x10] sm:$0xff] }
  0x25   : > { %v301_v2 = vld [vmem:[%s265_s17 + $0x20] sm:$0xff]  ;;  %298 = vst [vmem:[%s261_s18] sm:$0xff] %v297_v0  ;;  %300 = vst [vmem:[%s261_s18 + $0x8] sm:$0xff] %v299_v1 }
  0x26   : > { %302 = vst [vmem:[%s261_s18 + $0x10] sm:$0xff] %v301_v2 }
  0x27 PF: > { %p1034_p12 = scmp.ge.s32.totalorder %s1287_s8, 1  ;;  %p329_p13 = scmp.lt.s32.totalorder %s1287_s8, 5 }
  0x29   : > { %p330_p0 = pnand %p1034_p12, %p329_p13 }
  0x2a   : > { %s1424_s12 = sand.u32 (!%p330_p0), 1, %s1263_s25   ;;  %v646_v3 = vld [vmem:[%s1601_s3] sm:$0xff] (!%p330_p0)  ;;  %vm651_vm0 = vcmask (!%p330_p0), 31744   ;;  %s1607_s23 = smov (!%p330_p0), 112   ;;  %vm544_vm1 = vcmask (!%p330_p0), 162816   ;;  %v521_v7 = vld [vmem:[%s1600_s2 + $0x8] sm:$0xff] (!%p330_p0)  ;;  %v402_v21 = vlaneseq (!%p330_p0) }
  0x2b   : > { %333 = sbr.rel (%p330_p0) target bundleno = 417 (0x1a1), region = 82  ;;  %1091 = vmatprep.mubr.msk.f32.mxu1 (!%p330_p0), %vm651_vm0, %v646_v3  ;;  %s1290_s9 = smov (!%p330_p0), 127   ;;  %v516_v6 = vld [vmem:[%s1599_s1] sm:$0xff] (!%p330_p0)  ;;  %vm557_vm2 = vcmask (!%p330_p0), 1043456   ;;  %v1293_v9 = vmov (!%p330_p0), 0   ;;  %v647_v12 = vld [vmem:[%s1601_s3 + $0x8] sm:$0xff] (!%p330_p0) }
  0x2c   : > { %s1111_s21 = smul.u32 (!%p330_p0), 24, %s1424_s12  ;;  %p383_p1 = scmp.lt.s32.totalorder (!%p330_p0), %s1275_s28, 1  ;;  %1083 = vmatprep.mubr.msk.f32.mxu0 (!%p330_p0), %vm544_vm1, %v516_v6  ;;  %v520_v8 = vld [vmem:[%s1600_s2] sm:$0xff] (!%p330_p0)  ;;  %1192 = vset.pattern.permute.xlu1 (!%p330_p0), %v1293_v9  ;;  %v648_v13 = vld [vmem:[%s1601_s3 + $0x10] sm:$0xff] (!%p330_p0)  ;;  %v523_v15 = vld [vmem:[%s1600_s2 + $0x18] sm:$0xff] (!%p330_p0)  ;;  %v403_v22 = vand.u32 (!%p330_p0), 127, %v402_v21 }
  0x2d   : > { %p385_p2 = scmp.lt.s32.totalorder (!%p330_p0), %s1271_s27, 1  ;;  %s1291_s14 = smov (!%p330_p0), 16   ;;  %1191 = vset.pattern.permute.xlu0 (!%p330_p0), %v1293_v9  ;;  %v522_v14 = vld [vmem:[%s1600_s2 + $0x10] sm:$0xff] (!%p330_p0)  ;;  %v649_v16 = vld [vmem:[%s1601_s3 + $0x18] sm:$0xff] (!%p330_p0)  ;;  %v752_v17 = vld [vmem:[%s1602_s4] sm:$0xff] (!%p330_p0)  ;;  %v417_v23 = vshrl.u32 (!%p330_p0), %v402_v21, 7 }
  0x2e   : > { %s1431_s22 = scalar_lea.vmem (!%p330_p0), [#allocation2], %s1111_s21  ;;  %s1292_s19 = smov (!%p330_p0), 1   ;;  %v753_v18 = vld [vmem:[%s1602_s4 + $0x8] sm:$0xff] (!%p330_p0)  ;;  %v754_v19 = vld [vmem:[%s1602_s4 + $0x10] sm:$0xff] (!%p330_p0)  ;;  %v755_v20 = vld [vmem:[%s1602_s4 + $0x18] sm:$0xff] (!%p330_p0)  ;;  %v408_v24 = vand.u32 (!%p330_p0), 15, %v403_v22 }
  0x2f   : > { %v400_v4 = vld [vmem:[%s1431_s22 + $0x8] sm:$0xff] (!%p330_p0)  ;;  %v399_v5 = vld [vmem:[%s1431_s22] sm:$0xff] (!%p330_p0)  ;;  %v418_v25 = vadd.s32 (!%p330_p0), 8, %v417_v23  ;;  %vm444_vm3 = vcmp.ge.s32.totalorder (!%p330_p0), %v403_v22, 112  ;;  %vm456_vm5 = vcmp.lt.s32.totalorder (!%p330_p0), %v403_v22, 16  ;;  %vm468_vm7 = vcmp.lt.s32.totalorder (!%p330_p0), %v417_v23, 4 }
  0x30   : > { %447 = vrot.lane.b32.xlu1 (!%p330_p0), %v400_v4, %s1607_s23  ;;  %421 = vrot.lane.b32.xlu0 (!%p330_p0), %v399_v5, %s1290_s9  ;;  %vm420_vm4 = vcmp.eq.s32.totalorder (!%p330_p0), %v408_v24, 15  ;;  %vm432_vm6 = vcmp.eq.s32.totalorder (!%p330_p0), %v408_v24, 0  ;;  %v401_v37 = vld [vmem:[%s1431_s22 + $0x10] sm:$0xf] (!%p330_p0)  ;;  %v519_v40 = vld [vmem:[%s1599_s1 + $0x18] sm:$0xff] (!%p330_p0)  ;;  %vm865_vm9 = vcmask (!%p330_p0), 130048  }
  0x31   : > { %vm475_vm8 = vcmp.lt.s32.totalorder (!%p330_p0), %v418_v25, 12  ;;  %v517_v38 = vld [vmem:[%s1599_s1 + $0x8] sm:$0xff] (!%p330_p0)  ;;  %v518_v39 = vld [vmem:[%s1599_s1 + $0x10] sm:$0xff] (!%p330_p0)  ;;  %vm890_vm10 = vcmask (!%p330_p0), 1048448  }
  0x32   : > { %s384_s17 = scalar_select %p383_p1, %s1275_s28, 1 }
  0x33   : > { %s386_s18 = scalar_select %p385_p2, %s1271_s27, 1 }
  0x34   : > { %459 = vrot.lane.b32.xlu1 %v400_v4, %s1291_s14  ;;  %433 = vrot.lane.b32.xlu0 %v399_v5, %s1292_s19  ;;  %s1036_s21 = sshll.u32 %s384_s17, 1  ;;  %s1621_s19 = smov 112  }
  0x35   : > { %s388_s0 = sadd.s32 %s1036_s21, %s386_s18  ;;  %s1035_s17 = sshll.u32 %s1424_s12, 5 }
  0x36   : > { %s1037_s10 = sshll.u32 %s388_s0, 2  ;;  %s1515_s11 = scalar_lea.vmem [#allocation3], %s1035_s17 }
  0x37   : > { %s390_s14 = scalar_lea.vmem %s1603_s5, %s1037_s10  ;;  %s398_s18 = scalar_lea.vmem %s1604_s6, %s1037_s10 }
  0x38   : > { %v650_v10 = vld [vmem:[%s390_s14] sm:$0xf]  ;;  %531 = vperm.xlu1 %1192, %v521_v7   ;;  %526 = vperm.xlu0 %1191, %v520_v8   ;;  %s896_s21 = scalar_lea.sflag [#allocation4], %s1424_s12  ;;  %s1294_s10 = smov [#allocation3]  }
  0x39   : > { %v756_v11 = vld [vmem:[%s398_s18] sm:$0xf]  ;;  %1089 = vmatprep.subr.msk.mxu1 %vm557_vm2, %v650_v10  ;;  %s1056_s18 = sshll.u32 %s1275_s28, 3  ;;  %s910_s28 = sshll.u32 %s1515_s11, 4  ;;  %s1540_s28 = int_to_ptr.vmem [resolvable:$true] %s910_s28 }
  0x3a   : > { %1090 = vmatpush3.msk.msra.mxu1 %vm557_vm2, %v650_v10  ;;  %s907_s23 = sadd.s32 %s1271_s27, %s1056_s18  ;;  %s1193_s9 = scalar_lea.vmem %s1540_s28, 512 }
  0x3b   : > { %1092 = vmatmul.mubr.msk.f32.vlgmr.msra.gmra.mrb[0].mxu1 %vm651_vm0, %v647_v12  ;;  %1097 = vmatprep.subr.msk.mxu1 %vm557_vm2, %v756_v11  ;;  %s1057_s27 = sshll.u32 %s907_s23, 7  ;;  %p1194_p3 = scmp.ne.s32.totalorder %s1540_s28, %s1193_s9 }
  0x3c   : > { %1098 = vmatpush3.msk.msra.mxu1 %vm557_vm2, %v756_v11  ;;  %1094 = vmatprep.mubr.msk.f32.mxu1 %vm651_vm0, %v648_v13  ;;  %s1536_s29 = scalar_lea.hbm %s1605_s7, %s1057_s27  ;;  %s1197_s13 = sshll.u32 %s1294_s10, 4  ;;  %s1198_s13 = int_to_ptr.vmem [resolvable:$false] %s1197_s13 }
  0x3d   : > { %536 = vperm.xlu1 %1192, %v522_v14   ;;  %541 = vperm.xlu0 %1191, %v523_v15   ;;  %p1195_p4 = pnand %p1194_p3, %p1398_p8  ;;  %s1199_s14 = scalar_lea.vmem %s1198_s13, 1024 }
  0x3e   : > { %p1200_p6 = scmp.lt.s32.totalorder %s1540_s28, %s1198_s13  ;;  %p1201_p7 = scmp.lt.s32.totalorder %s1199_s14, %s1193_s9 }
  0x3f   : > { %1095 = vmatmul.mubr.msk.f32.gmra.mrb[2].mxu1 %vm651_vm0, %v649_v16  ;;  %p1196_p5 = pneg %p1195_p4 }
  0x40   : > { %1099 = vmatprep.mubr.msk.f32.mxu1 %vm651_vm0, %v752_v17  ;;  %p1202_p10 = por %p1201_p7, %p1200_p6 }
  0x42   : > { %p1203_p11 = pnand %p1202_p10, %p1196_p5 }
  0x43   : > { %1100 = vmatmul.mubr.msk.f32.vlgmr.msra.gmra.mrb[4].mxu1 %vm651_vm0, %v753_v18 }
  0x44   : > { %1102 = vmatprep.mubr.msk.f32.mxu1 %vm651_vm0, %v754_v19 }
  0x47   : > { %1103 = vmatmul.mubr.msk.f32.gmra.mrb[6].mxu1 %vm651_vm0, %v755_v20 }
  0xa2   : > { %v448_v26 = vpop.permute.xlu1 %447  ;;  %v422_v27 = vpop.permute.xlu0 %421 }
  0xa3   : > { %v454_v30 = vsel %vm444_vm3, 0.0, %v448_v26  ;;  %v429_v31 = vsel %vm420_vm4, 0.0, %v422_v27 }
  0xa6   : > { %v460_v28 = vpop.permute.xlu1 %459  ;;  %v434_v29 = vpop.permute.xlu0 %433 }
  0xa7   : > { %v466_v32 = vsel %vm456_vm5, 0.0, %v460_v28  ;;  %v441_v33 = vsel %vm432_vm6, 0.0, %v434_v29 }
  0xa8   : > { %v496_v34 = vsel %vm475_vm8, %v454_v30, %v466_v32  ;;  %v513_v35 = vsel %vm468_vm7, %v429_v31, %v441_v33 }
  0xa9   : > { %v1105_v36 = vpack.c.bf16 %v496_v34, %v513_v35 }
  0xab   : > { %1106 = vmatprep.subr.bf16.mxu0 %v1105_v36 }
  0xac   : > { %1108 = vmatpush3.bf16.msra.mxu0 %v1105_v36 }
  0xad   : > { %1081 = vmatprep.subr.msk.mxu0 %vm557_vm2, %v401_v37 }
  0xb0   : > { %1082 = vmatpush3.msk.msra.mxu0 %vm557_vm2, %v401_v37 }
  0xb1   : > { %1084 = vmatmul.mubr.msk.f32.vlgmr.msra.gmra.mrb[0].mxu0 %vm544_vm1, %v517_v38 }
  0xb2   : > { %1086 = vmatprep.mubr.msk.f32.mxu0 %vm544_vm1, %v518_v39 }
  0xb5   : > { %1087 = vmatmul.mubr.msk.f32.gmra.mrb[2].mxu0 %vm544_vm1, %v519_v40 }
  0xb7   : > { %v527_v49 = vpop.permute.xlu0 %526  ;;  %v532_v50 = vpop.permute.xlu1 %531 }
  0xbc   : > { %v542_v52 = vpop.permute.xlu0 %541  ;;  %v537_v55 = vpop.permute.xlu1 %536 }
 0x10e   : > { %v1093_v41 = vpop.f32.mrb[0].mxu1 }
 0x10f   : > { %v733_v42 = vpop.f32.mrb[1].mxu1 }
 0x112   : > { %v1096_v43 = vpop.f32.mrb[2].mxu1 }
 0x113   : > { %v743_v44 = vpop.f32.mrb[3].mxu1 }
 0x116   : > { %v1101_v45 = vpop.f32.mrb[4].mxu1 }
 0x117   : > { %v838_v46 = vpop.f32.mrb[5].mxu1  ;;  %876 = vrot.lane.b32.xlu0 %v1101_v45, %s1621_s19 }
 0x118   : > { %874 = vrot.lane.b32.xlu1 %v838_v46, %s1621_s19 }
 0x11a   : > { %v1104_v47 = vpop.f32.mrb[6].mxu1 }
 0x11b   : > { %v848_v48 = vpop.f32.mrb[7].mxu1  ;;  %880 = vrot.lane.b32.xlu0 %v1104_v47, %s1621_s19 }
 0x11c   : > { %878 = vrot.lane.b32.xlu1 %v848_v48, %s1621_s19 }
 0x184   : > { %v1085_v51 = vpop.f32.mrb[0].mxu0 }
 0x185   : > { %v633_v53 = vadd.f32 %v1085_v51, %v532_v50  ;;  %v627_v54 = vpop.f32.mrb[1].mxu0 }
 0x186   : > { %v628_v56 = vadd.f32 %v627_v54, %v527_v49 }
 0x187   : > { %858 = vst [vmem:[%s1515_s11 + $0x8] sm:$0xff] %v633_v53  ;;  %v862_v57 = vadd.f32 %v1093_v41, %v633_v53 }
 0x188   : > { %857 = vst [vmem:[%s1515_s11] sm:$0xff] %v628_v56  ;;  %v861_v58 = vadd.f32 %v733_v42, %v628_v56  ;;  %v1088_v59 = vpop.f32.mrb[2].mxu0 }
 0x189   : > { %867 = vst.msk [vmem:[%s1515_s11 + $0x8] sm:$0xff] %vm865_vm9, %v862_v57  ;;  %v877_v60 = vpop.permute.xlu0 %876  ;;  %v643_v61 = vadd.f32 %v1088_v59, %v542_v52  ;;  %v637_v62 = vpop.f32.mrb[3].mxu0 }
 0x18a   : > { %866 = vst.msk [vmem:[%s1515_s11] sm:$0xff] %vm865_vm9, %v861_v58  ;;  %v887_v63 = vadd.f32 %v877_v60, %v633_v53  ;;  %v875_v0 = vpop.permute.xlu1 %874  ;;  %v638_v1 = vadd.f32 %v637_v62, %v537_v55 }
 0x18b   : > { %v886_v2 = vadd.f32 %v875_v0, %v628_v56  ;;  %860 = vst [vmem:[%s1515_s11 + $0x18] sm:$0xff] %v643_v61  ;;  %v864_v3 = vadd.f32 %v1096_v43, %v643_v61 }
 0x18c   : > { %892 = vst.msk [vmem:[%s1515_s11 + $0x8] sm:$0xff] %vm890_vm10, %v887_v63  ;;  %859 = vst [vmem:[%s1515_s11 + $0x10] sm:$0xff] %v638_v1  ;;  %v863_v4 = vadd.f32 %v743_v44, %v638_v1 }
 0x18d   : > { %891 = vst.msk [vmem:[%s1515_s11] sm:$0xff] %vm890_vm10, %v886_v2  ;;  %v881_v5 = vpop.permute.xlu0 %880 }
 0x18e   : > { %869 = vst.msk [vmem:[%s1515_s11 + $0x18] sm:$0xff] %vm865_vm9, %v864_v3  ;;  %868 = vst.msk [vmem:[%s1515_s11 + $0x10] sm:$0xff] %vm865_vm9, %v863_v4  ;;  %v889_v6 = vadd.f32 %v881_v5, %v643_v61  ;;  %v879_v7 = vpop.permute.xlu1 %878 }
 0x18f   : > { %v888_v8 = vadd.f32 %v879_v7, %v638_v1 }
 0x190   : > { %894 = vst.msk [vmem:[%s1515_s11 + $0x18] sm:$0xff] %vm890_vm10, %v889_v6 }
 0x191   : > { %893 = vst.msk [vmem:[%s1515_s11 + $0x10] sm:$0xff] %vm890_vm10, %v888_v8 }
 0x192   : > { %1206 = shalt.err (!%p1203_p11)
}
 0x193   : > { %s1207_s22 = scalar_lea.hbm %s1536_s29, 512  ;;  %s1211_s18 = scalar_lea.hbm %s1605_s7, 2048 }
 0x194   : > { %p1208_p12 = scmp.ne.s32.totalorder %s1536_s29, %s1207_s22  ;;  %p1212_p1 = scmp.lt.u32.totalorder %s1536_s29, %s1605_s7 }
 0x195   : > { %p1213_p2 = scmp.lt.u32.totalorder %s1211_s18, %s1207_s22  ;;  %p1215_p4 = scmp.lt.u32.totalorder %s1207_s22, %s1536_s29 }
 0x196   : > { %p1209_p13 = pnand %p1208_p12, %p1398_p8 }
 0x197   : > { %p1214_p3 = por %p1213_p2, %p1212_p1 }
 0x198   : > { %p1210_p0 = pneg %p1209_p13 }
 0x199   : > { %p1216_p5 = por %p1215_p4, %p1214_p3 }
 0x19b   : > { %p1217_p6 = pnand %p1216_p5, %p1210_p0 }
 0x19d   : > { %1220 = shalt.err (!%p1217_p6)
}
 0x19e   : > { %s1295_s27 = smov 128   ;;  %s1296_s0 = smov 256  }
 0x19f   : > { %s1297_s30 = smov 8  }
 0x1a0   : > { %1112 = dma.vmem_to_hbm [thread:$0]  (%p1398_p8), %s1540_s28, 512, %s1536_s29, %s896_s21, %s1295_s27, %s1296_s0, %s1297_s30  }
 0x1a1 PF: > { %p1118_p7 = scmp.ge.s32.totalorder %s1287_s8, 2  ;;  %s925_s9 = sand.u32 1, %s1259_s24  }
 0x1a2   : > { %s926_s10 = scalar_lea.sflag [#allocation4], %s925_s9 }
 0x1a3   : > { %p1115_p10 = pnand %p1118_p7, %p1402_p9 }
 0x1a5   : > { %1254 = dma.done.wait (!%p1115_p10), %s926_s10, 512  }
 0x1a6   : > { %1256 = vsyncadd (!%p1115_p10), %s926_s10, 4294966784  ;;  %s20_s8 = sadd.s32 1, %s1287_s8   ;;  %s1622_s27 = sld [smem:[#allocation6_spill]] }
 0x1a7   : > { %p17_p11 = scmp.ge.s32.totalorder %s20_s8, 6   ;;  %s1623_s28 = sld [smem:[#allocation7_spill]] }
 0x1a8   : > { %s1624_s29 = sld [smem:[#allocation8_spill]]  ;;  %s1625_s30 = sld [smem:[#allocation9_spill]] }
 0x1a9   : > { %s1626_s24 = smov %s1263_s25  ;;  %s1627_s25 = smov %s1267_s26 }
 0x1aa   : > { %s1628_s26 = smov %s1410_s20  ;;  %19 = sbr.rel (!%p17_p11) target bundleno = 7 (0x7), region = 132 }
 0x1b1   :  { %931 = vsyncpa [#allocation4], 1 }
 0x1b2   :  { %933 = vsyncpa [#allocation4 + $0x1], 1 }

</bundles_post_ra>
